<compile_context>
chip_gen: v7x
topology: tpu7x:2x2x1
jax: 0.10.0
libtpu: 0.0.40
codegen_flags: <defaults>
</compile_context>

<pallas_src>
import functools

import jax
import jax.numpy as jnp
from jax import lax
from jax.experimental import pallas as pl
from jax.experimental.pallas import tpu as pltpu


def mlp_kernel(x_ref, w1t_ref, b1_ref, w2t_ref, b2_ref, oT_ref):
    # x:   (TM, S) f32  streamed batch tile (raw row-major layout, no wrapper pass)
    # w1t: (H, S)  f32  resident
    # b1:  (H, 1)  f32  resident
    # w2t: (A, H)  f32  resident
    # b2:  (A, 1)  f32  resident
    # oT:  (A, TM) f32  lane-dense output tile (batch on lanes)
    x = x_ref[...]

    # Linear 1, transposed in-kernel:  hT = W1^T @ x^T  -> (H, TM).
    # Contract the feature axis (minor dim) of both operands (A @ B.T form),
    # which puts batch on the 128-wide lane axis without any wrapper transpose.
    hT = lax.dot_general(
        w1t_ref[...], x,
        dimension_numbers=(((1,), (1,)), ((), ())),
        preferred_element_type=jnp.float32)
    # Dropout(0.2) eval mode == identity.
    hT = jnp.maximum(hT + b1_ref[...], 0.0)          # bias (bcast over lanes) + ReLU
    # TODO(synk): b1 could be folded into the (idle) MXU via an augmented
    #             operand to shave one VPU pass on v7x; skipped for simplicity.

    # Linear 2, transposed: (A, H) @ (H, TM) -> (A, TM).
    logitsT = jnp.dot(w2t_ref[...], hT, preferred_element_type=jnp.float32)
    logitsT = logitsT + b2_ref[...]

    # Dropout(0.2) eval mode == identity.
    # Softmax over the feature (sublane) axis == PyTorch Softmax(dim=1).
    m = jnp.max(logitsT, axis=0, keepdims=True)
    e = jnp.exp(logitsT - m)
    denom = jnp.sum(e, axis=0, keepdims=True)
    oT_ref[...] = e / denom                          # exact normalization


def _round_up(n, m):
    return ((n + m - 1) // m) * m


@functools.partial(jax.jit, static_argnames=("tm",))
def mlp_forward(x, w1, b1, w2, b2, *, tm=16384):
    """x: (B, state_dim) f32; w1: (state_dim, 32); b1: (32,);
       w2: (32, action_dim); b2: (action_dim,). Returns (B, action_dim) f32."""
    B, S = x.shape
    H = w1.shape[1]
    A = w2.shape[1]

    # Batch tile: multiple of 128 lanes, clamped to the batch, and capped so the
    # grid has >= 2 steps once B >= 256 (lets "parallel" engage both v7x TCs).
    tm_eff = max(128, min(_round_up(tm, 128), _round_up(B, 128)))
    if B >= 256:
        half = max(128, (_round_up(B, 128) // 2) // 128 * 128)
        tm_eff = min(tm_eff, half)
    grid = (pl.cdiv(B, tm_eff),)   # no batch padding: boundary block is masked

    # Tiny resident operands (transposes/reshapes here are negligible).
    w1t = w1.astype(jnp.float32).T                 # (H, S)
    w2t = w2.astype(jnp.float32).T                 # (A, H)
    b1c = jnp.reshape(b1, (H, 1)).astype(jnp.float32)
    b2c = jnp.reshape(b2, (A, 1)).astype(jnp.float32)
    x_f = x.astype(jnp.float32)

    cost = pl.CostEstimate(
        flops=2 * B * (S * H + H * A),
        transcendentals=B * A,
        bytes_accessed=(x_f.size * 4 + w1t.size * 4 + w2t.size * 4
                        + b1c.size * 4 + b2c.size * 4 + A * B * 4),
    )

    outT = pl.pallas_call(
        mlp_kernel,
        out_shape=jax.ShapeDtypeStruct((A, B), jnp.float32),
        grid=grid,
        in_specs=[
            pl.BlockSpec((tm_eff, S), lambda i: (i, 0)),   # streamed raw x tile
            pl.BlockSpec((H, S), lambda i: (0, 0)),        # resident weights/biases
            pl.BlockSpec((H, 1), lambda i: (0, 0)),
            pl.BlockSpec((A, H), lambda i: (0, 0)),
            pl.BlockSpec((A, 1), lambda i: (0, 0)),
        ],
        out_specs=pl.BlockSpec((A, tm_eff), lambda i: (0, i)),   # lane-dense store
        compiler_params=pltpu.CompilerParams(
            dimension_semantics=("parallel",),             # megacore on v7x
            vmem_limit_bytes=32 * 1024 * 1024),
        cost_estimate=cost,
    )(x_f, w1t, b1c, w2t, b2c)

    # Single un-transpose back to the module's (B, A) layout. Consumers that can
    # take (A, B) directly should use outT to skip this HBM pass entirely.
    return outT.T


if __name__ == "__main__":
    # Small shapes consistent with the module.
    batch = 8
    state_dim = 16
    hidden = 32
    action_dim = 8

    key = jax.random.PRNGKey(0)
    kx, k1, k2, k3, k4 = jax.random.split(key, 5)

    # PyTorch nn.Linear stores weight as (out, in); we store the transpose
    # (in, out) so the reference math is x @ W + b.
    x = jax.random.normal(kx, (batch, state_dim), dtype=jnp.float32)
    w1 = jax.random.normal(k1, (state_dim, hidden), dtype=jnp.float32) * 0.1
    b1 = jax.random.normal(k2, (hidden,), dtype=jnp.float32) * 0.1
    w2 = jax.random.normal(k3, (hidden, action_dim), dtype=jnp.float32) * 0.1
    b2 = jax.random.normal(k4, (action_dim,), dtype=jnp.float32) * 0.1

    out = jax.block_until_ready(mlp_forward(x, w1, b1, w2, b2))

    assert out.shape == (batch, action_dim)
    ref = jax.nn.softmax(jnp.maximum(x @ w1 + b1, 0.0) @ w2 + b2, axis=1)
    assert jnp.allclose(out, ref, atol=1e-4), jnp.max(jnp.abs(out - ref))
    assert jnp.allclose(jnp.sum(out, axis=1), 1.0, atol=1e-4)

    # Exercise the multi-tile grid + ragged (non-multiple-of-128) batch path.
    xb = jax.random.normal(kx, (300, state_dim), dtype=jnp.float32)
    outb = jax.block_until_ready(mlp_forward(xb, w1, b1, w2, b2, tm=128))
    refb = jax.nn.softmax(jnp.maximum(xb @ w1 + b1, 0.0) @ w2 + b2, axis=1)
    assert outb.shape == (300, action_dim)
    assert jnp.allclose(outb, refb, atol=1e-4), jnp.max(jnp.abs(outb - refb))
    assert jnp.allclose(jnp.sum(outb, axis=1), 1.0, atol=1e-4)

    print("KERNEL_OK")
</pallas_src>

<mosaic_0001>
module attributes {stable_mosaic.version = 11 : i64} {
  func.func @mlp_kernel(%arg0: i32, %arg1: memref<128x16xf32, #tpu.memory_space<vmem>>, %arg2: memref<32x16xf32, #tpu.memory_space<vmem>>, %arg3: memref<32x1xf32, #tpu.memory_space<vmem>>, %arg4: memref<8x32xf32, #tpu.memory_space<vmem>>, %arg5: memref<8x1xf32, #tpu.memory_space<vmem>>, %arg6: memref<8x128xf32, #tpu.memory_space<vmem>>) attributes {dimension_semantics = [#tpu.dimension_semantics<parallel>], iteration_bounds = array<i64: 1>, scalar_prefetch = 0 : i64, scratch_operands = 0 : i64, tpu.core_type = #tpu.core_type<tc>, window_params = [{transform_indices = @transform_0, window_bounds = array<i64: 128, 16>}, {pipeline_mode = #tpu.pipeline_mode<synchronous>, transform_indices = @transform_1, window_bounds = array<i64: 32, 16>}, {pipeline_mode = #tpu.pipeline_mode<synchronous>, transform_indices = @transform_2, window_bounds = array<i64: 32, 1>}, {pipeline_mode = #tpu.pipeline_mode<synchronous>, transform_indices = @transform_3, window_bounds = array<i64: 8, 32>}, {pipeline_mode = #tpu.pipeline_mode<synchronous>, transform_indices = @transform_4, window_bounds = array<i64: 8, 1>}, {transform_indices = @transform_5, window_bounds = array<i64: 8, 128>}]} {
    %c0 = arith.constant 0 : index
    %c0_0 = arith.constant 0 : index
    %0 = vector.load %arg1[%c0, %c0_0] : memref<128x16xf32, #tpu.memory_space<vmem>>, vector<128x16xf32>
    %c0_1 = arith.constant 0 : index
    %c0_2 = arith.constant 0 : index
    %1 = vector.load %arg2[%c0_1, %c0_2] : memref<32x16xf32, #tpu.memory_space<vmem>>, vector<32x16xf32>
    %cst = arith.constant dense<0.000000e+00> : vector<32x128xf32>
    %2 = tpu.matmul %1, %0, %cst {dimension_numbers = #tpu.dot_dimension_numbers<[1], [1], [0], [0], [0, 0, 1, 0], [], []>} : vector<32x16xf32>, vector<128x16xf32>, vector<32x128xf32> -> vector<32x128xf32>
    %c0_3 = arith.constant 0 : index
    %c0_4 = arith.constant 0 : index
    %3 = vector.load %arg3[%c0_3, %c0_4] : memref<32x1xf32, #tpu.memory_space<vmem>>, vector<32x1xf32>
    %4 = vector.broadcast %3 : vector<32x1xf32> to vector<32x128xf32>
    %5 = arith.addf %2, %4 : vector<32x128xf32>
    %cst_5 = arith.constant 0.000000e+00 : f32
    %6 = vector.broadcast %cst_5 : f32 to vector<32x128xf32>
    %7 = arith.maximumf %5, %6 : vector<32x128xf32>
    %c0_6 = arith.constant 0 : index
    %c0_7 = arith.constant 0 : index
    %8 = vector.load %arg4[%c0_6, %c0_7] : memref<8x32xf32, #tpu.memory_space<vmem>>, vector<8x32xf32>
    %cst_8 = arith.constant dense<0.000000e+00> : vector<8x128xf32>
    %9 = tpu.matmul %8, %7, %cst_8 {dimension_numbers = #tpu.dot_dimension_numbers<[1], [0], [0], [1], [0, 0, 1, 1], [], []>} : vector<8x32xf32>, vector<32x128xf32>, vector<8x128xf32> -> vector<8x128xf32>
    %c0_9 = arith.constant 0 : index
    %c0_10 = arith.constant 0 : index
    %10 = vector.load %arg5[%c0_9, %c0_10] : memref<8x1xf32, #tpu.memory_space<vmem>>, vector<8x1xf32>
    %11 = vector.broadcast %10 : vector<8x1xf32> to vector<8x128xf32>
    %12 = arith.addf %9, %11 : vector<8x128xf32>
    %cst_11 = arith.constant dense<0xFF800000> : vector<128xf32>
    %13 = vector.multi_reduction <maximumf>, %12, %cst_11 [0] : vector<8x128xf32> to vector<128xf32>
    %14 = vector.shape_cast %13 : vector<128xf32> to vector<1x128xf32>
    %15 = vector.broadcast %14 : vector<1x128xf32> to vector<8x128xf32>
    %16 = arith.subf %12, %15 : vector<8x128xf32>
    %17 = math.exp %16 : vector<8x128xf32>
    %cst_12 = arith.constant dense<0.000000e+00> : vector<128xf32>
    %18 = vector.multi_reduction <add>, %17, %cst_12 [0] : vector<8x128xf32> to vector<128xf32>
    %19 = vector.shape_cast %18 : vector<128xf32> to vector<1x128xf32>
    %20 = vector.broadcast %19 : vector<1x128xf32> to vector<8x128xf32>
    %21 = arith.divf %17, %20 : vector<8x128xf32>
    %c0_13 = arith.constant 0 : index
    %c0_14 = arith.constant 0 : index
    %22 = vector.load %arg6[%c0_13, %c0_14] : memref<8x128xf32, #tpu.memory_space<vmem>>, vector<8x128xf32>
    tpu.vector_store %arg6[%c0_13, %c0_14], %21 {strides = array<i32>} : memref<8x128xf32, #tpu.memory_space<vmem>>, vector<8x128xf32>,
    return
  }
  func.func @transform_0(%arg0: i32) -> (i32, i32) {
    %c0_i32 = arith.constant 0 : i32
    %c0_i32_0 = arith.constant 0 : i32
    return %arg0, %c0_i32 : i32, i32
  }
  func.func @transform_1(%arg0: i32) -> (i32, i32) {
    %c0_i32 = arith.constant 0 : i32
    %c0_i32_0 = arith.constant 0 : i32
    %c0_i32_1 = arith.constant 0 : i32
    return %c0_i32, %c0_i32_0 : i32, i32
  }
  func.func @transform_2(%arg0: i32) -> (i32, i32) {
    %c0_i32 = arith.constant 0 : i32
    %c0_i32_0 = arith.constant 0 : i32
    %c0_i32_1 = arith.constant 0 : i32
    return %c0_i32, %c0_i32_0 : i32, i32
  }
  func.func @transform_3(%arg0: i32) -> (i32, i32) {
    %c0_i32 = arith.constant 0 : i32
    %c0_i32_0 = arith.constant 0 : i32
    %c0_i32_1 = arith.constant 0 : i32
    return %c0_i32, %c0_i32_0 : i32, i32
  }
  func.func @transform_4(%arg0: i32) -> (i32, i32) {
    %c0_i32 = arith.constant 0 : i32
    %c0_i32_0 = arith.constant 0 : i32
    %c0_i32_1 = arith.constant 0 : i32
    return %c0_i32, %c0_i32_0 : i32, i32
  }
  func.func @transform_5(%arg0: i32) -> (i32, i32) {
    %c0_i32 = arith.constant 0 : i32
    %c0_i32_0 = arith.constant 0 : i32
    return %c0_i32, %arg0 : i32, i32
  }
}

</mosaic_0001>

<bundles_post_ra>
// kernel: mlp_forward.1
= control target key start
LH: loop header
LB: loop body
LE: loop exit
PB: predicated region body
PF: predicated region fallthrough
CT: control target
= control target key end

     0   :  { %vm64_vm0 = vcmask 130048   ;;  %v476_v3 = vmov 0   ;;  %v477_v35 = vmov 0.0|0.0   ;;  %vm478_vm2 = vmmov 0   ;;  %s633_s0 = inlined_call_operand.vmem [shape: f32[8,16], index: 0, kind: input, shape index: {}]   ;;  %s634_s1 = inlined_call_operand.vmem [shape: f32[32,16], index: 1, kind: input, shape index: {}]   ;;  %s635_s2 = inlined_call_operand.vmem [shape: f32[32,1], index: 2, kind: input, shape index: {}]   ;;  %s636_s4 = inlined_call_operand.vmem [shape: f32[8,1], index: 4, kind: input, shape index: {}]   ;;  %s637_s3 = inlined_call_operand.vmem [shape: f32[8,32], index: 3, kind: input, shape index: {}]   ;;  %s638_s5 = inlined_call_operand.vmem [shape: f32[8,8], index: 5, kind: output, shape index: {}]  }
   0x1   :  { %v20_v0 = vld [vmem:[%s633_s0] sm:$0xff]  ;;  %v21_v1 = vld [vmem:[%s633_s0 + $0x8] sm:$0xff]  ;;  %vm518_vm1 = vmpackc.low %vm64_vm0, %vm64_vm0  ;;  %470 = vset.pattern.permute.xlu0 %v476_v3  ;;  %471 = vset.pattern.permute.xlu1 %v476_v3  ;;  %v479_v36 = vmov 0.0   ;;  %vm221_vm3 = vcmask 261120  }
   0x2   :  { %v412_v4 = vpack.c.bf16 %v21_v1, %v20_v0  ;;  %v22_v5 = vld [vmem:[%s633_s0 + $0x10] sm:$0xff]  ;;  %v23_v6 = vld [vmem:[%s633_s0 + $0x18] sm:$0xff]  ;;  %v36_v8 = vld [vmem:[%s634_s1] sm:$0xff]  ;;  %460 = vmatprep.subr.bf16.mxu1 %v477_v35  ;;  %409 = vmatprep.mubr.msk.f32.mxu1 %vm478_vm2, %v479_v36 }
   0x3   :  { %v418_v7 = vpack.c.bf16 %v23_v6, %v22_v5  ;;  %v24_v9 = vld [vmem:[%s633_s0 + $0x20] sm:$0xff]  ;;  %v25_v10 = vld [vmem:[%s633_s0 + $0x28] sm:$0xff]  ;;  %395 = vmatprep.mubr.msk.f32.mxu0 %vm64_vm0, %v36_v8  ;;  %v42_v12 = vld [vmem:[%s635_s2 + $0x10] sm:$0xff] }
   0x4   :  { %414 = vmatprep.subr.msk.bf16.mxu0 %vm518_vm1, %v412_v4  ;;  %v40_v11 = vld [vmem:[%s635_s2] sm:$0xff]  ;;  %56 = vperm.xlu1 %471, %v42_v12   ;;  %v424_v13 = vpack.c.bf16 %v25_v10, %v24_v9  ;;  %v41_v14 = vld [vmem:[%s635_s2 + $0x8] sm:$0xff]  ;;  %v43_v15 = vld [vmem:[%s635_s2 + $0x18] sm:$0xff] }
   0x5   :  { %417 = vmatpush3.bf16.xpose.msk.msra.mxu0 %vm518_vm1, %v412_v4  ;;  %46 = vperm.xlu0 %470, %v40_v11   ;;  %v215_v16 = vld [vmem:[%s636_s4] sm:$0xff]  ;;  %v26_v17 = vld [vmem:[%s633_s0 + $0x30] sm:$0xff]  ;;  %v27_v18 = vld [vmem:[%s633_s0 + $0x38] sm:$0xff] }
   0x6   :  { %420 = vmatprep.subr.msk.bf16.mxu0 %vm518_vm1, %v418_v7  ;;  %v430_v19 = vpack.c.bf16 %v27_v18, %v26_v17  ;;  %v28_v20 = vld [vmem:[%s633_s0 + $0x40] sm:$0xff]  ;;  %v29_v21 = vld [vmem:[%s633_s0 + $0x48] sm:$0xff]  ;;  %v30_v23 = vld [vmem:[%s633_s0 + $0x50] sm:$0xff] }
   0x7   :  { %v436_v22 = vpack.c.bf16 %v29_v21, %v28_v20  ;;  %v31_v24 = vld [vmem:[%s633_s0 + $0x58] sm:$0xff]  ;;  %v32_v26 = vld [vmem:[%s633_s0 + $0x60] sm:$0xff]  ;;  %v33_v27 = vld [vmem:[%s633_s0 + $0x68] sm:$0xff] }
   0x8   :  { %61 = vperm.xlu1 %471, %v43_v15   ;;  %v442_v25 = vpack.c.bf16 %v31_v24, %v30_v23  ;;  %v448_v28 = vpack.c.bf16 %v33_v27, %v32_v26  ;;  %v34_v29 = vld [vmem:[%s633_s0 + $0x70] sm:$0xff]  ;;  %v35_v30 = vld [vmem:[%s633_s0 + $0x78] sm:$0xff]  ;;  %v37_v32 = vld [vmem:[%s634_s1 + $0x8] sm:$0xff] }
   0x9   :  { %51 = vperm.xlu0 %470, %v41_v14   ;;  %v454_v31 = vpack.c.bf16 %v35_v30, %v34_v29  ;;  %v38_v33 = vld [vmem:[%s634_s1 + $0x10] sm:$0xff]  ;;  %v39_v34 = vld [vmem:[%s634_s1 + $0x18] sm:$0xff]  ;;  %v214_v55 = vld [vmem:[%s637_s3] sm:$0xff] }
   0xd   :  { %423 = vmatpush3.bf16.xpose.msk.msra.mxu0 %vm518_vm1, %v418_v7  ;;  %218 = vperm.xlu0 %470, %v215_v16  }
   0xe   :  { %426 = vmatprep.subr.msk.bf16.mxu0 %vm518_vm1, %v424_v13 }
  0x15   :  { %429 = vmatpush3.bf16.xpose.msk.msra.mxu0 %vm518_vm1, %v424_v13 }
  0x16   :  { %432 = vmatprep.subr.msk.bf16.mxu0 %vm518_vm1, %v430_v19 }
  0x1d   :  { %435 = vmatpush3.bf16.xpose.msk.msra.mxu0 %vm518_vm1, %v430_v19 }
  0x1e   :  { %438 = vmatprep.subr.msk.bf16.mxu0 %vm518_vm1, %v436_v22 }
  0x25   :  { %441 = vmatpush3.bf16.xpose.msk.msra.mxu0 %vm518_vm1, %v436_v22 }
  0x26   :  { %444 = vmatprep.subr.msk.bf16.mxu0 %vm518_vm1, %v442_v25 }
  0x2d   :  { %447 = vmatpush3.bf16.xpose.msk.msra.mxu0 %vm518_vm1, %v442_v25 }
  0x2e   :  { %450 = vmatprep.subr.msk.bf16.mxu0 %vm518_vm1, %v448_v28 }
  0x35   :  { %453 = vmatpush3.bf16.xpose.msk.msra.mxu0 %vm518_vm1, %v448_v28 }
  0x36   :  { %456 = vmatprep.subr.msk.bf16.mxu0 %vm518_vm1, %v454_v31 }
  0x3d   :  { %459 = vmatpush3.bf16.xpose.msk.msra.mxu0 %vm518_vm1, %v454_v31 }
  0x44   :  { %396 = vmatmul.mubr.msk.f32.vlgmr.msra.gmra.mrb[0].mxu0 %vm64_vm0, %v37_v32 }
  0x45   :  { %398 = vmatprep.mubr.msk.f32.mxu0 %vm64_vm0, %v38_v33 }
  0x48   :  { %399 = vmatmul.mubr.msk.f32.gmra.mrb[2].mxu0 %vm64_vm0, %v39_v34 }
  0x83   :  { %v57_v38 = vpop.permute.xlu1 %56 }
  0x84   :  { %v47_v37 = vpop.permute.xlu0 %46 }
  0x87   :  { %v62_v45 = vpop.permute.xlu1 %61 }
  0x88   :  { %v52_v39 = vpop.permute.xlu0 %51 }
  0x8c   :  { %v219_v56 = vpop.permute.xlu0 %218 }
 0x117   :  { %v397_v40 = vpop.f32.mrb[0].mxu0 }
 0x118   :  { %v197_v41 = vadd.f32 %v397_v40, %v52_v39  ;;  %v191_v42 = vpop.f32.mrb[1].mxu0 }
 0x119   :  { %v192_v43 = vadd.f32 %v191_v42, %v47_v37 }
 0x11a   :  { %v211_v44 = vmax.f32 %v197_v41, 0.0 }
 0x11b   :  { %v210_v46 = vmax.f32 %v192_v43, 0.0  ;;  %v400_v47 = vpop.f32.mrb[2].mxu0 }
 0x11c   :  { %v207_v48 = vadd.f32 %v400_v47, %v62_v45  ;;  %v201_v49 = vpop.f32.mrb[3].mxu0 }
 0x11d   :  { %v202_v50 = vadd.f32 %v201_v49, %v57_v38  ;;  %v461_v51 = vpack.c.bf16 %v211_v44, %v210_v46 }
 0x11e   :  { %v213_v52 = vmax.f32 %v207_v48, 0.0 }
 0x11f   :  { %v212_v53 = vmax.f32 %v202_v50, 0.0  ;;  %462 = vmatpush3.bf16.msra.mxu1 %v461_v51 }
 0x120   :  { %463 = vmatprep.subr.bf16.mxu1 %v477_v35 }
 0x121   :  { %v464_v54 = vpack.c.bf16 %v213_v52, %v212_v53 }
 0x123   :  { %465 = vmatpush3.bf16.msra.mxu1 %v464_v54 }
 0x126   :  { %410 = vmatmul.mubr.msk.f32.vlgmr.msra.gmra.mrb[0].mxu1 %vm221_vm3, %v214_v55 }
 0x1f9   :  { %v291_v57 = vpop.f32.mrb[0].mxu1 }
 0x1fa   :  { %v292_v58 = vadd.f32 %v291_v57, %v219_v56  ;;  %v411_v59 = vpop.f32.mrb[1].mxu1 }
 0x1fc   :  { %v295_v60 = vrot.slane %v292_v58, 4 }
 0x1fe   :  { %v296_v61 = vmax.f32 %v292_v58, %v295_v60 }
 0x200   :  { %v297_v62 = vrot.slane %v296_v61, 2 }
 0x202   :  { %v298_v63 = vmax.f32 %v296_v61, %v297_v62 }
 0x204   :  { %v299_v0 = vrot.slane %v298_v63, 1 }
 0x206   :  { %v300_v1 = vmax.f32 %v298_v63, %v299_v0 }
 0x208   :  { %v301_v2 = vsub.f32 %v292_v58, %v300_v1 }
 0x20a   :  { %v302_v3 = vmul.f32 1.442695, %v301_v2 }
 0x20c   :  { %472 = vpow2.f32 %v302_v3 }
 0x216   :  { %v473_v4 = vpop.eup %472 }
 0x217   :  { %v304_v5 = vrot.slane %v473_v4, 4 }
 0x219   :  { %v305_v6 = vadd.f32 %v473_v4, %v304_v5 }
 0x21b   :  { %v306_v7 = vrot.slane %v305_v6, 2 }
 0x21d   :  { %v307_v8 = vadd.f32 %v306_v7, %v305_v6 }
 0x21f   :  { %v308_v9 = vrot.slane %v307_v8, 1 }
 0x221   :  { %v309_v10 = vadd.f32 %v308_v9, %v307_v8 }
 0x223   :  { %474 = vrcp.f32 %v309_v10 }
 0x22d   :  { %v475_v11 = vpop.eup %474 }
 0x22e   :  { %v311_v12 = vmul.f32 %v475_v11, %v473_v4 }
 0x230   :  { %312 = vst [vmem:[%s638_s5] sm:$0xff] %v311_v12 }

</bundles_post_ra>
